<compile_context>
chip_gen: v5e
topology: v5e:2x2
jax: 0.10.0
libtpu: 0.0.40
codegen_flags: <defaults>
</compile_context>

<pallas_src>
import math
import numpy as np
import jax
import jax.numpy as jnp
from jax.experimental import pallas as pl
from jax.experimental.pallas import tpu as pltpu


# ----------------------------------------------------------------------------
# Resample-matrix construction (host-side glue, plain numpy) — mirrors
# sinc/lanczos/ramp and F.interpolate(mode='bicubic', align_corners=True).
# ----------------------------------------------------------------------------
def _sinc(x):
    xs = np.where(x == 0, 1.0, x)
    return np.where(x != 0, np.sin(np.pi * xs) / (np.pi * xs), 1.0)


def _lanczos(x, a):
    cond = np.logical_and(-a < x, x < a)
    out = np.where(cond, _sinc(x) * _sinc(x / a), 0.0)
    return out / out.sum()


def _ramp(ratio, width):
    n = math.ceil(width / ratio + 1)
    out = np.empty([n], dtype=np.float64)
    cur = 0.0
    for i in range(n):
        out[i] = cur
        cur += ratio
    return np.concatenate([-out[1:][::-1], out])[1:-1]


def _lanczos_conv_matrix(h, d):
    # 'same'-size 1-D conv with reflect padding, expressed as an (h, h) matrix.
    k = _lanczos(_ramp(d / h, 2), 2)
    kh = k.shape[0]
    pad = (kh - 1) // 2
    assert pad < h
    L = np.zeros((h, h), dtype=np.float64)
    for i in range(h):
        for t in range(kh):
            j = i + t - pad
            if j < 0:
                j = -j
            elif j >= h:
                j = 2 * (h - 1) - j
            L[i, j] += k[t]
    return L


_A = -0.75  # PyTorch bicubic coefficient


def _cubic_weights(t):
    def c1(x):
        return ((_A + 2.0) * x - (_A + 3.0)) * x * x + 1.0

    def c2(x):
        return ((_A * x - 5.0 * _A) * x + 8.0 * _A) * x - 4.0 * _A

    return np.array([c2(t + 1.0), c1(t), c1(1.0 - t), c2(2.0 - t)])


def _bicubic_matrix(h, d):
    # 1-D factor of F.interpolate(..., mode='bicubic', align_corners=True).
    B = np.zeros((d, h), dtype=np.float64)
    scale = (h - 1) / (d - 1) if d > 1 else 0.0
    for i in range(d):
        real = i * scale
        idx = int(np.floor(real))
        t = real - idx
        w = _cubic_weights(t)
        for m in range(4):
            j = min(max(idx - 1 + m, 0), h - 1)
            B[i, j] += w[m]
    return B


def _resample_matrix(h, d):
    M = _bicubic_matrix(h, d)
    if d < h:
        M = M @ _lanczos_conv_matrix(h, d)
    return M.astype(np.float32)


def _round_bf16(a):
    return np.asarray(
        jnp.asarray(np.asarray(a, np.float32), jnp.bfloat16).astype(jnp.float32))


# ----------------------------------------------------------------------------
# Pallas kernel: per (NC-tile, cutout) step — two NC-folded matmuls + noise.
# ----------------------------------------------------------------------------
def _cutout_kernel(facs_ref, x_ref, mht_ref, mwt_ref, noise_ref, out_ref):
    i = pl.program_id(1)                       # cutout index
    fac = facs_ref[i]                          # scalar from SMEM

    xb = x_ref[...]                            # (NCB*W, H) bf16, rows = (n, w)
    mht = mht_ref[...]                         # (H, cut)   bf16 (pre-transposed)
    mwt = mwt_ref[...]                         # (W, cut)   bf16 (pre-transposed)

    w = mwt.shape[0]
    cut = mht.shape[1]
    ncb = xb.shape[0] // w

    # H contraction with NC folded into M:  u[(n,w), p] = sum_h x[n,h,w] mh[p,h]
    u = jnp.dot(xb, mht, preferred_element_type=jnp.float32)        # (NCB*W, cut)
    # single intermediate transpose per step: (n, w, p) -> (n, p, w)
    u = jnp.transpose(u.reshape(ncb, w, cut), (0, 2, 1)).reshape(ncb * cut, w)
    # W contraction:  y[(n,p), q] = sum_w u[(n,p), w] mw[q, w]
    y = jnp.dot(u.astype(mwt.dtype), mwt, preferred_element_type=jnp.float32)

    out_ref[...] = y + fac * noise_ref[...].astype(jnp.float32)


def _pick_nc_block(nc, side_x, side_y, budget_bytes=24 << 20):
    """Largest divisor of nc whose double-buffered bf16 x-block fits budget."""
    per_channel = 2 * 2 * side_x * side_y      # bf16, double buffered
    ncb = nc
    while ncb > 1 and ncb * per_channel > budget_bytes:
        ncb -= 1
        while nc % ncb:
            ncb -= 1
    return ncb


def make_cutouts(x, *, cut_size, cutn, cut_pow=1.0, noise_fac=0.1, key):
    x_np = np.asarray(x, dtype=np.float32)
    N, C, sideY, sideX = x_np.shape
    assert N == 1, "torch reference broadcast of `facs` requires N == 1"
    NC = N * C
    max_size = min(sideX, sideY)
    min_size = min(sideX, sideY, cut_size)

    k_size, k_ox, k_oy, k_fac, k_noise = jax.random.split(key, 5)

    # Batched host-side draws (one dispatch each; no per-cutout device syncs).
    size_u = np.asarray(jax.random.uniform(k_size, (cutn,), dtype=jnp.float32))
    sizes = (size_u.astype(np.float64) ** cut_pow * (max_size - min_size)
             + min_size).astype(np.int64)
    ox = np.asarray(jax.random.randint(k_ox, (cutn,), 0, sideX - sizes + 1))
    oy = np.asarray(jax.random.randint(k_oy, (cutn,), 0, sideY - sizes + 1))

    # Shifted resample matrices: nonzero columns of the (cut, size) resample
    # operator placed at [oy, oy+size) / [ox, ox+size), so cropping/padding of
    # the image is never materialized.  Passed pre-transposed.
    mht_all = np.zeros((cutn, sideY, cut_size), dtype=np.float32)
    mwt_all = np.zeros((cutn, sideX, cut_size), dtype=np.float32)
    for i in range(cutn):
        size = int(sizes[i])
        m_t = _resample_matrix(size, cut_size).T           # (size, cut)
        mht_all[i, oy[i]:oy[i] + size, :] = m_t
        mwt_all[i, ox[i]:ox[i] + size, :] = m_t

    # Image passed ONCE, pre-transposed so H is the lane (contraction) axis of
    # the first matmul: rows = (n, w), lanes = h.
    x_t = x_np.reshape(NC, sideY, sideX).transpose(0, 2, 1).reshape(NC * sideX, sideY)

    facs = jax.random.uniform(k_fac, (cutn,), dtype=jnp.float32) * noise_fac
    noise = jax.random.normal(k_noise, (cutn, NC, cut_size, cut_size),
                              dtype=jnp.float32)

    x_dev = jnp.asarray(x_t, dtype=jnp.bfloat16)
    mht_dev = jnp.asarray(mht_all, dtype=jnp.bfloat16)
    mwt_dev = jnp.asarray(mwt_all, dtype=jnp.bfloat16)
    noise_dev = noise.reshape(cutn, NC * cut_size, cut_size).astype(jnp.bfloat16)

    ncb = _pick_nc_block(NC, sideX, sideY)
    n_tiles = NC // ncb

    # TODO(synk): the Kornia random augmentations (RandomHorizontalFlip,
    # RandomSharpness, RandomAffine, RandomPerspective, ColorJitter) have no
    # clean Pallas equivalent and are omitted.

    # Raise scoped VMEM only when the per-step blocks actually need it.
    est_vmem = (2 * 2 * ncb * sideX * sideY              # x block (bf16, dbl-buffered)
                + 2 * 2 * (sideY + sideX) * cut_size     # Mh^T / Mw^T blocks
                + 2 * 2 * ncb * cut_size * cut_size      # noise block
                + 2 * 4 * ncb * cut_size * cut_size      # out block
                + 3 * 4 * ncb * sideX * cut_size)        # intermediates
    cp_kwargs = dict(dimension_semantics=("parallel", "parallel"))
    if est_vmem > (24 << 20):
        cp_kwargs["vmem_limit_bytes"] = min(int(est_vmem * 1.5), 100 << 20)

    out = pl.pallas_call(
        _cutout_kernel,
        out_shape=jax.ShapeDtypeStruct((cutn, NC * cut_size, cut_size), jnp.float32),
        grid=(n_tiles, cutn),
        in_specs=[
            pl.BlockSpec(memory_space=pltpu.MemorySpace.SMEM),                       # facs (cutn,)
            pl.BlockSpec((ncb * sideX, sideY), lambda c, i: (c, 0)),                 # image (constant in i)
            pl.BlockSpec((None, sideY, cut_size), lambda c, i: (i, 0, 0)),           # Mh^T
            pl.BlockSpec((None, sideX, cut_size), lambda c, i: (i, 0, 0)),           # Mw^T
            pl.BlockSpec((None, ncb * cut_size, cut_size), lambda c, i: (i, c, 0)),  # noise
        ],
        out_specs=pl.BlockSpec((None, ncb * cut_size, cut_size), lambda c, i: (i, c, 0)),
        compiler_params=pltpu.CompilerParams(**cp_kwargs),
    )(facs, x_dev, mht_dev, mwt_dev, noise_dev)

    # torch.cat(cutouts, dim=0): cutout-major, then input batch (N == 1 here).
    batch = out.reshape(cutn * N, C, cut_size, cut_size)

    aux = dict(
        x_t=_round_bf16(x_t).reshape(NC, sideX, sideY),   # (n, w, h) bf16-rounded
        mht=_round_bf16(mht_all),
        mwt=_round_bf16(mwt_all),
        facs=np.asarray(facs),
        noise=_round_bf16(np.asarray(noise)),
    )
    return batch, aux


if __name__ == "__main__":
    key = jax.random.PRNGKey(0)
    k_in, k_cut = jax.random.split(key)

    N, C, H, W = 1, 4, 16, 16          # facs broadcast in the torch reference requires N == 1
    cut_size, cutn = 8, 4
    x = jax.random.normal(k_in, (N, C, H, W), dtype=jnp.float32)

    batch, aux = make_cutouts(x, cut_size=cut_size, cutn=cutn,
                              cut_pow=1.0, noise_fac=0.1, key=k_cut)
    batch = jax.block_until_ready(batch)
    assert batch.shape == (cutn * N, C, cut_size, cut_size)

    # numpy reference of the kernel math (bf16-rounded operands, f32 accumulate)
    x_t = aux["x_t"]                                        # (NC, W, H)
    mht = aux["mht"]                                        # (cutn, H, cut)
    mwt = aux["mwt"]                                        # (cutn, W, cut)
    u_ref = np.einsum('nwh,ihp->inwp', x_t, mht)            # H contraction
    u_ref = _round_bf16(u_ref)                              # kernel casts intermediate to bf16
    y_ref = np.einsum('inwp,iwq->inpq', u_ref, mwt)         # W contraction
    ref = y_ref + aux["facs"][:, None, None, None] * aux["noise"]
    ref = ref.reshape(cutn * N, C, cut_size, cut_size)
    assert np.allclose(np.asarray(batch), ref, rtol=5e-2, atol=5e-2), \
        float(np.max(np.abs(np.asarray(batch) - ref)))

    print("KERNEL_OK")
</pallas_src>

<mosaic_0001>
module attributes {stable_mosaic.version = 11 : i64} {
  func.func @_cutout_kernel(%arg0: i32, %arg1: i32, %arg2: memref<4xf32, #tpu.memory_space<smem>>, %arg3: memref<64x16xbf16, #tpu.memory_space<vmem>>, %arg4: memref<1x16x8xbf16, #tpu.memory_space<vmem>>, %arg5: memref<1x16x8xbf16, #tpu.memory_space<vmem>>, %arg6: memref<1x32x8xbf16, #tpu.memory_space<vmem>>, %arg7: memref<1x32x8xf32, #tpu.memory_space<vmem>>) attributes {dimension_semantics = [#tpu.dimension_semantics<parallel>, #tpu.dimension_semantics<parallel>], iteration_bounds = array<i64: 1, 4>, scalar_prefetch = 0 : i64, scratch_operands = 0 : i64, tpu.core_type = #tpu.core_type<tc>, window_params = [{transform_indices = @transform_0, window_bounds = array<i64: 4>}, {transform_indices = @transform_1, window_bounds = array<i64: 64, 16>}, {transform_indices = @transform_2, window_bounds = array<i64: 1, 16, 8>}, {transform_indices = @transform_3, window_bounds = array<i64: 1, 16, 8>}, {transform_indices = @transform_4, window_bounds = array<i64: 1, 32, 8>}, {transform_indices = @transform_5, window_bounds = array<i64: 1, 32, 8>}]} {
    %0 = arith.index_cast %arg1 : i32 to index
    %1 = memref.load %arg2[%0] : memref<4xf32, #tpu.memory_space<smem>>
    %c0 = arith.constant 0 : index
    %c0_0 = arith.constant 0 : index
    %2 = vector.load %arg3[%c0, %c0_0] : memref<64x16xbf16, #tpu.memory_space<vmem>>, vector<64x16xbf16>
    %c0_1 = arith.constant 0 : index
    %c0_2 = arith.constant 0 : index
    %c0_3 = arith.constant 0 : index
    %3 = vector.load %arg4[%c0_1, %c0_2, %c0_3] : memref<1x16x8xbf16, #tpu.memory_space<vmem>>, vector<1x16x8xbf16>
    %4 = vector.shape_cast %3 : vector<1x16x8xbf16> to vector<16x8xbf16>
    %c0_4 = arith.constant 0 : index
    %c0_5 = arith.constant 0 : index
    %c0_6 = arith.constant 0 : index
    %5 = vector.load %arg5[%c0_4, %c0_5, %c0_6] : memref<1x16x8xbf16, #tpu.memory_space<vmem>>, vector<1x16x8xbf16>
    %6 = vector.shape_cast %5 : vector<1x16x8xbf16> to vector<16x8xbf16>
    %cst = arith.constant dense<0.000000e+00> : vector<64x8xf32>
    %7 = tpu.matmul %2, %4, %cst {dimension_numbers = #tpu.dot_dimension_numbers<[1], [0], [0], [1], [0, 0, 1, 1], [], []>} : vector<64x16xbf16>, vector<16x8xbf16>, vector<64x8xf32> -> vector<64x8xf32>
    %8 = vector.shape_cast %7 : vector<64x8xf32> to vector<4x16x8xf32>
    %9 = tpu.transpose %8, [0, 2, 1] : vector<4x16x8xf32> -> vector<4x8x16xf32>
    %10 = vector.shape_cast %9 : vector<4x8x16xf32> to vector<32x16xf32>
    %11 = arith.truncf %10 : vector<32x16xf32> to vector<32x16xbf16>
    %cst_7 = arith.constant dense<0.000000e+00> : vector<32x8xf32>
    %12 = tpu.matmul %11, %6, %cst_7 {dimension_numbers = #tpu.dot_dimension_numbers<[1], [0], [0], [1], [0, 0, 1, 1], [], []>} : vector<32x16xbf16>, vector<16x8xbf16>, vector<32x8xf32> -> vector<32x8xf32>
    %c0_8 = arith.constant 0 : index
    %c0_9 = arith.constant 0 : index
    %c0_10 = arith.constant 0 : index
    %13 = vector.load %arg6[%c0_8, %c0_9, %c0_10] : memref<1x32x8xbf16, #tpu.memory_space<vmem>>, vector<1x32x8xbf16>
    %14 = vector.shape_cast %13 : vector<1x32x8xbf16> to vector<32x8xbf16>
    %15 = arith.extf %14 : vector<32x8xbf16> to vector<32x8xf32>
    %16 = vector.broadcast %1 : f32 to vector<32x8xf32>
    %17 = arith.mulf %16, %15 : vector<32x8xf32>
    %18 = arith.addf %12, %17 : vector<32x8xf32>
    %c0_11 = arith.constant 0 : index
    %c0_12 = arith.constant 0 : index
    %c0_13 = arith.constant 0 : index
    %19 = vector.load %arg7[%c0_11, %c0_12, %c0_13] : memref<1x32x8xf32, #tpu.memory_space<vmem>>, vector<1x32x8xf32>
    %20 = vector.shape_cast %19 : vector<1x32x8xf32> to vector<32x8xf32>
    %21 = vector.shape_cast %18 : vector<32x8xf32> to vector<1x32x8xf32>
    tpu.vector_store %arg7[%c0_11, %c0_12, %c0_13], %21 {strides = array<i32>} : memref<1x32x8xf32, #tpu.memory_space<vmem>>, vector<1x32x8xf32>,
    return
  }
  func.func @transform_0(%arg0: i32, %arg1: i32) -> i32 {
    %c0_i32 = arith.constant 0 : i32
    %c0_i32_0 = arith.constant 0 : i32
    return %c0_i32 : i32
  }
  func.func @transform_1(%arg0: i32, %arg1: i32) -> (i32, i32) {
    %c0_i32 = arith.constant 0 : i32
    %c0_i32_0 = arith.constant 0 : i32
    return %arg0, %c0_i32 : i32, i32
  }
  func.func @transform_2(%arg0: i32, %arg1: i32) -> (i32, i32, i32) {
    %c0_i32 = arith.constant 0 : i32
    %c0_i32_0 = arith.constant 0 : i32
    %c0_i32_1 = arith.constant 0 : i32
    return %arg1, %c0_i32, %c0_i32_0 : i32, i32, i32
  }
  func.func @transform_3(%arg0: i32, %arg1: i32) -> (i32, i32, i32) {
    %c0_i32 = arith.constant 0 : i32
    %c0_i32_0 = arith.constant 0 : i32
    %c0_i32_1 = arith.constant 0 : i32
    return %arg1, %c0_i32, %c0_i32_0 : i32, i32, i32
  }
  func.func @transform_4(%arg0: i32, %arg1: i32) -> (i32, i32, i32) {
    %c0_i32 = arith.constant 0 : i32
    %c0_i32_0 = arith.constant 0 : i32
    return %arg1, %arg0, %c0_i32 : i32, i32, i32
  }
  func.func @transform_5(%arg0: i32, %arg1: i32) -> (i32, i32, i32) {
    %c0_i32 = arith.constant 0 : i32
    %c0_i32_0 = arith.constant 0 : i32
    return %arg1, %arg0, %c0_i32 : i32, i32, i32
  }
}

</mosaic_0001>

<bundles_post_ra>
// kernel: tpu_custom_call.1
= control target key start
LH: loop header
LB: loop body
LE: loop exit
PB: predicated region body
PF: predicated region fallthrough
CT: control target
= control target key end

     0   :  { %10 = vsyncpa [#allocation3], 0  ;;  %s936_s18 = smov 0   ;;  %s938_s19 = smov 0   ;;  %s1015_s0 = inlined_call_operand.vmem [shape: f32[4], index: 0, kind: input, shape index: {}]   ;;  %s1016_s1 = inlined_call_operand.vmem [shape: bf16[64,16], index: 1, kind: input, shape index: {}]   ;;  %s1017_s2 = inlined_call_operand.vmem [shape: bf16[4,16,8], index: 2, kind: input, shape index: {}]   ;;  %s1018_s3 = inlined_call_operand.vmem [shape: bf16[4,16,8], index: 3, kind: input, shape index: {}]   ;;  %s1019_s4 = inlined_call_operand.vmem [shape: bf16[4,32,8], index: 4, kind: input, shape index: {}]   ;;  %s1020_s5 = inlined_call_operand.vmem [shape: f32[4,32,8], index: 5, kind: output, shape index: {}]  }
   0x1   :  { %s940_s20 = smov 0  }
   0x2 LB: > { %s739_s21 = sadd.s32 4294967295, %s903_s20   ;;  %s25_s22 = sadd.s32 1, %s899_s19  ;;  %s903_s20 = sphi %s940_s20, %s16_s20   ;;  %s899_s19 = sphi %s938_s19, %s1022_s19   ;;  %s895_s18 = sphi %s936_s18, %s1021_s18  }
   0x3   : > { %p26_p0 = scmp.ge.s32.totalorder %s25_s22, 4  ;;  %p741_p1 = scmp.ge.s32.totalorder %s903_s20, 1 }
   0x4   : > { %p188_p2 = scmp.lt.s32.totalorder %s903_s20, 5  ;;  %p816_p4 = scmp.eq.s32.totalorder %s739_s21, 0 }
   0x5   : > { %s1024_s22 = smov (%p26_p0, %s25_s22), 0  ;;  %s200_s25 = sshll.u32 %s1015_s0, 4  ;;  %s201_s25 = int_to_ptr.vmem [resolvable:$true] %s200_s25 }
   0x6   : > { %p189_p3 = pnand %p741_p1, %p188_p2  ;;  %s905_s26 = smov [#allocation2]  }
   0x8   : > { %p812_p5 = pneg %p189_p3  ;;  %251 = sbr.rel (%p189_p3) target bundleno = 482 (0x1e2), region = 40 }
   0xa   : > { %p813_p6 = pnand %p816_p4, %p812_p5 }
   0xc   : > { %815 = dma.vmem_to_smem (!%p813_p6), %s201_s25, 16, %s905_s26, [#allocation3]  }
   0xd   : > { %890 = dma.done.wait (%p816_p4), [#allocation3], 16  }
   0xe   : > { %892 = vsyncadd (%p816_p4), [#allocation3], 4294967280 }
   0xf   : > { %258 = sfence }
  0x10   : > { %p310_p7 = scmp.lt.s32.totalorder %s895_s18, 3  ;;  %v791_v1 = vld [vmem:[%s1016_s1] sm:$0xff]  ;;  %v792_v2 = vld [vmem:[%s1016_s1 + $0x8] sm:$0xff]  ;;  %vm380_vm0 = vcmask 130048   ;;  %v794_v3 = vld [vmem:[%s1016_s1 + $0x18] sm:$0xff]  ;;  %s341_s23 = sld [smem:[#allocation2 + %s895_s18]] }
  0x11   : > { %v793_v4 = vld [vmem:[%s1016_s1 + $0x10] sm:$0xff]  ;;  %vm596_vm1 = vcmask 64512  }
  0x12   : > { %s962_s27 = scalar_select %p310_p7, %s895_s18, 3 }
  0x14   : > { %s787_s28 = sshll.u32 %s962_s27, 3  ;;  %s789_s21 = sshll.u32 %s962_s27, 4 }
  0x15   : > { %s314_s6 = scalar_lea.vmem %s1017_s2, %s787_s28  ;;  %s319_s17 = scalar_lea.vmem %s1018_s3, %s787_s28 }
  0x16   : > { %v795_v0 = vld [vmem:[%s314_s6] sm:$0xff]  ;;  %s328_s26 = scalar_lea.vmem %s1019_s4, %s789_s21  ;;  %v560_v28 = vstv %s341_s23  ;;  %s790_s28 = sshll.u32 %s962_s27, 5 }
  0x17   : > { %400 = vmatpush.bf16.msra.mxu0 %v795_v0  ;;  %806 = vmatpush.bf16.msra.mxu2 %v795_v0  ;;  %v796_v17 = vld [vmem:[%s319_s17] sm:$0xff]  ;;  %s338_s6 = scalar_lea.vmem %s1020_s5, %s790_s28  ;;  %v805_v34 = vld [vmem:[%s328_s26 + $0x8] sm:$0xff]  }
  0x18   : > { %807 = vmatpush.bf16.msra.mxu3 %v795_v0  ;;  %584 = vmatpush.bf16.msra.mxu1 %v796_v17  ;;  %v798_v26 = vld [vmem:[%s328_s26] sm:$0xff]   ;;  %v803_v37 = vunpack.c.l.bf16 %v805_v34  ;;  %v804_v41 = vunpack.c.h.bf16 %v805_v34 }
  0x19   : > { %v799_v27 = vunpack.c.l.bf16 %v798_v26  ;;  %v800_v32 = vunpack.c.h.bf16 %v798_v26 }
  0x1a   : > { %775 = vmatmul.msk.bf16.vlgmr.msra.gmra.mxu0 %vm380_vm0, %v791_v1  ;;  %776 = vmatmul.msk.bf16.vlgmr.msra.gmra.mxu2 %vm380_vm0, %v792_v2  ;;  %v563_v38 = vmul.f32 %v803_v37, %v560_v28  ;;  %v564_v42 = vmul.f32 %v804_v41, %v560_v28 }
  0x1b   : > { %778 = vmatmul.msk.bf16.vlgmr.msra.gmra.mxu3 %vm380_vm0, %v794_v3  ;;  %v561_v29 = vmul.f32 %v799_v27, %v560_v28  ;;  %v562_v33 = vmul.f32 %v800_v32, %v560_v28 }
  0x2a   : > { %777 = vmatmul.msk.bf16.gmra.mxu2 %vm380_vm0, %v793_v4 }
  0x97   : > { %v402_v5 = vpop.f32.mrf.mxu0 }
  0x9d   : > { %v407_v6 = vpop.f32.mrf.mxu2 }
  0x9e   : > { %v844_v7 = vpack.i.bf16 %v407_v6, %v402_v5  ;;  %v417_v11 = vpop.f32.mrf.mxu3 }
  0x9f   : > { %v404_v8 = vpop.f32.mrf.mxu0 }
  0xa0   : > { %845 = vxpose.xlu0.b32.start [1/2] (short) (narrow) %v844_v7, 8 }
  0xa5   : > { %v409_v9 = vpop.f32.mrf.mxu2 }
  0xa6   : > { %v846_v10 = vpack.i.bf16 %v409_v9, %v404_v8  ;;  %v419_v14 = vpop.f32.mrf.mxu3 }
  0xa8   : > { %847 = vxpose.xlu0.b32.end [2/2] (short) (narrow) %v846_v10, 8 }
  0xad   : > { %v412_v12 = vpop.f32.mrf.mxu2 }
  0xae   : > { %v853_v13 = vpack.i.bf16 %v417_v11, %v412_v12 }
  0xb0   : > { %854 = vxpose.xlu1.b32.start [1/2] (short) (narrow) %v853_v13, 8 }
  0xb5   : > { %v414_v15 = vpop.f32.mrf.mxu2 }
  0xb6   : > { %v855_v16 = vpack.i.bf16 %v419_v14, %v414_v15 }
  0xb8   : > { %856 = vxpose.xlu1.b32.end [2/2] (short) (narrow) %v855_v16, 8 }
 0x144   : > { %v848_v18 = vpop.trf.xlu0 }
 0x145   : > { %v852_v19 = vunpack.i.h.bf16 %v848_v18  ;;  %v849_v20 = vunpack.i.l.bf16 %v848_v18 }
 0x147   : > { %v550_v21 = vpack.c.bf16 %v852_v19, %v849_v20 }
 0x149   : > { %783 = vmatmul.msk.bf16.vlgmr.msra.gmra.mxu1 %vm380_vm0, %v550_v21 }
 0x154   : > { %v857_v22 = vpop.trf.xlu1 }
 0x155   : > { %v861_v23 = vunpack.i.h.bf16 %v857_v22  ;;  %v858_v24 = vunpack.i.l.bf16 %v857_v22 }
 0x157   : > { %v551_v25 = vpack.c.bf16 %v861_v23, %v858_v24 }
 0x159   : > { %784 = vmatmul.msk.bf16.gmra.mxu1 %vm380_vm0, %v551_v25 }
 0x1c6   : > { %v586_v30 = vpop.f32.mrf.mxu1 }
 0x1c7   : > { %v587_v31 = vadd.f32 %v586_v30, %v561_v29 }
 0x1c9   : > { %597 = vst.msk [vmem:[%s338_s6] sm:$0xff] %vm596_vm1, %v587_v31 }
 0x1ce   : > { %v588_v35 = vpop.f32.mrf.mxu1 }
 0x1cf   : > { %v589_v36 = vadd.f32 %v588_v35, %v562_v33 }
 0x1d1   : > { %598 = vst.msk [vmem:[%s338_s6 + $0x8] sm:$0xff] %vm596_vm1, %v589_v36 }
 0x1d6   : > { %v591_v39 = vpop.f32.mrf.mxu1 }
 0x1d7   : > { %v592_v40 = vadd.f32 %v591_v39, %v563_v38 }
 0x1d9   : > { %599 = vst.msk [vmem:[%s338_s6 + $0x10] sm:$0xff] %vm596_vm1, %v592_v40 }
 0x1de   : > { %v593_v43 = vpop.f32.mrf.mxu1 }
 0x1df   : > { %v594_v44 = vadd.f32 %v593_v43, %v564_v42 }
 0x1e1   : > { %600 = vst.msk [vmem:[%s338_s6 + $0x18] sm:$0xff] %vm596_vm1, %v594_v44 }
 0x1e2 PF: > { %s16_s20 = sadd.s32 1, %s903_s20   ;;  %s1021_s18 = smov %s899_s19 }
 0x1e3   : > { %p13_p8 = scmp.ge.s32.totalorder %s16_s20, 6   ;;  %s1022_s19 = smov %s1024_s22 }
 0x1e5   :  { %15 = sbr.rel (!%p13_p8) target bundleno = 2 (0x2), region = 84 }
 0x1ea   :  { %631 = vsyncpa [#allocation3], 1 }
 0x1eb   :  { %633 = vsyncpa [#allocation3 + $0x1], 1 }

</bundles_post_ra>
